<compile_context>
chip_gen: v6e
topology: v6e:2x2x1
jax: 0.10.0
libtpu: 0.0.40
codegen_flags: <defaults>
</compile_context>

<pallas_src>
import functools

import jax
import jax.numpy as jnp
from jax.experimental import pallas as pl
from jax.experimental.pallas import tpu as pltpu


def _round_up(x, m):
    return -(-x // m) * m


def _ce_block_kernel(scores_ref, labels_ref, sum_ref, cnt_ref, *, vocab, chunk):
    """One row block: per-row CE via a two-pass (max+target, exp-sum) chunk loop."""
    tm = scores_ref.shape[0]
    lbl = labels_ref[...]                                     # (tm, 1) int32

    # ---- pass A: row max + target-logit gather, in the input dtype ----------
    m = jnp.full((tm, 1), -jnp.inf, dtype=jnp.float32)
    tgt = jnp.zeros((tm, 1), dtype=jnp.float32)
    for start in range(0, vocab, chunk):
        w = min(chunk, vocab - start)
        s_c = scores_ref[:, start:start + w]                  # (tm, w), input dtype
        m = jnp.maximum(
            m, jnp.max(s_c, axis=-1, keepdims=True).astype(jnp.float32))
        col = jax.lax.broadcasted_iota(jnp.int32, (tm, w), 1) + start
        # at most one column matches per row -> sum is exact in any dtype
        tgt = tgt + jnp.sum(jnp.where(col == lbl, s_c, 0),
                            axis=-1, keepdims=True).astype(jnp.float32)

    # ---- pass B: sum of exp(s - m), in f32 -----------------------------------
    se = jnp.zeros((tm, 1), dtype=jnp.float32)
    for start in range(0, vocab, chunk):
        w = min(chunk, vocab - start)
        s_c = scores_ref[:, start:start + w].astype(jnp.float32)
        se = se + jnp.sum(jnp.exp(s_c - m), axis=-1, keepdims=True)

    lse = m + jnp.log(se)                                      # (tm, 1)
    valid = lbl != -1                                          # padded rows have -1
    row_loss = jnp.where(valid, lse - tgt, 0.0)                # masks ragged tail rows

    sum_ref[...] = jnp.broadcast_to(jnp.sum(row_loss), sum_ref.shape)
    cnt_ref[...] = jnp.broadcast_to(jnp.sum(valid.astype(jnp.float32)),
                                    cnt_ref.shape)


def loss_for_pretraining(prediction_scores, masked_lm_labels,
                         next_sentence_labels=None, *,
                         tm=None, vocab_chunk=2048, cast_scores_to_bf16=False):
    """prediction_scores: [..., V] float; masked_lm_labels: [...] int."""
    # next_sentence_labels is accepted but unused: the reference module's
    # forward returns only the masked-LM cross-entropy.
    V = prediction_scores.shape[-1]
    scores = prediction_scores.reshape(-1, V)
    if cast_scores_to_bf16 and scores.dtype == jnp.float32:
        # Optional (gated): halves streamed HBM bytes on memory-bound chips (v5e).
        scores = scores.astype(jnp.bfloat16)
    labels = masked_lm_labels.reshape(-1, 1).astype(jnp.int32)
    N = scores.shape[0]

    itemsize = jnp.dtype(scores.dtype).itemsize
    min_rows = {4: 8, 2: 16, 1: 32}.get(itemsize, 8)

    # ---- chip-aware VMEM budget ----------------------------------------------
    try:
        vmem_cap = int(getattr(pltpu.get_tpu_info(), "vmem_capacity_bytes",
                               64 << 20))
    except Exception:
        vmem_cap = 64 << 20                         # conservative (v7x-sized)
    vmem_limit = min(vmem_cap * 3 // 4, 100 << 20)

    # ---- vocab chunk width for the in-kernel two-pass loop --------------------
    tv = max(128, (int(vocab_chunk) // 128) * 128)
    if -(-V // tv) > 32:                            # bound trace size for huge V
        tv = _round_up(-(-V // 32), 128)
    tv_eff = min(tv, _round_up(V, 128))

    # ---- row tile: budget double-buffered score stream + f32 chunk temps +
    #      streamed (tm,1) labels (lane-padded to ~512 B/row per buffer) -------
    if tm is None:
        per_row = 2 * V * itemsize + 4 * tv_eff * 4 + 1024
        tm = (vmem_limit * 7 // 10) // per_row
    tm = max(min_rows, min(int(tm), 4096))
    tm = min(tm, _round_up(N, min_rows))            # never taller than needed
    tm = max(min_rows, (tm // min_rows) * min_rows)
    # TODO(synk): for extreme vocabularies where even tm=min_rows overflows the
    # VMEM budget (2*min_rows*V*itemsize > limit), add a vocab grid axis with an
    # online LSE instead of a full-V row block.

    n_blocks = -(-N // tm)
    Np = n_blocks * tm
    if Np != N:
        # Only labels are padded (4 bytes/row); the ragged last score block is
        # masked in-kernel via these -1 labels. Scores are never copied.
        labels = jnp.concatenate(
            [labels, jnp.full((Np - N, 1), -1, dtype=jnp.int32)], axis=0)

    kernel = functools.partial(_ce_block_kernel, vocab=V, chunk=int(tv))

    out_shape = (jax.ShapeDtypeStruct((n_blocks, 8, 128), jnp.float32),
                 jax.ShapeDtypeStruct((n_blocks, 8, 128), jnp.float32))
    out_spec = pl.BlockSpec((1, 8, 128), lambda i: (i, 0, 0))

    sums, cnts = pl.pallas_call(
        kernel,
        out_shape=out_shape,
        grid=(n_blocks,),
        in_specs=[
            # Full-V row block: last block dim equals the array dim, so no
            # lane alignment / HBM re-padding of the scores is required.
            pl.BlockSpec((tm, V), lambda i: (i, 0)),
            pl.BlockSpec((tm, 1), lambda i: (i, 0)),
        ],
        out_specs=(out_spec, out_spec),
        compiler_params=pltpu.CompilerParams(
            dimension_semantics=("parallel",),      # megacore sharding on v7x
            vmem_limit_bytes=int(vmem_limit),
        ),
    )(scores, labels)

    total_sum = jnp.sum(sums[:, 0, 0])
    total_cnt = jnp.sum(cnts[:, 0, 0])
    # 0/0 -> NaN when every label is -1, matching torch CrossEntropyLoss.
    return total_sum / total_cnt


def _reference_loss(prediction_scores, masked_lm_labels):
    V = prediction_scores.shape[-1]
    s = prediction_scores.reshape(-1, V).astype(jnp.float32)
    lbl = masked_lm_labels.reshape(-1)
    logp = jax.nn.log_softmax(s, axis=-1)
    safe_lbl = jnp.where(lbl == -1, 0, lbl)
    nll = -jnp.take_along_axis(logp, safe_lbl[:, None], axis=-1)[:, 0]
    valid = lbl != -1
    return jnp.sum(jnp.where(valid, nll, 0.0)) / jnp.sum(valid.astype(jnp.float32))


def _run_case(key, B, S, V):
    k1, k2, k3 = jax.random.split(key, 3)
    scores = jax.random.normal(k1, (B, S, V), dtype=jnp.float32)
    labels = jax.random.randint(k2, (B, S), 0, V, dtype=jnp.int32)
    ignore_mask = jax.random.bernoulli(k3, 0.5, (B, S))
    mlm_labels = jnp.where(ignore_mask, -1, labels).astype(jnp.int32)
    mlm_labels = mlm_labels.at[0, 0].set(labels[0, 0])  # ensure >=1 valid label
    next_sentence = jnp.zeros((B,), dtype=jnp.int32)     # unused by forward
    out = jax.block_until_ready(
        loss_for_pretraining(scores, mlm_labels, next_sentence))
    ref = _reference_loss(scores, mlm_labels)
    assert jnp.allclose(out, ref, rtol=1e-5, atol=1e-5), (B, S, V, out, ref)


if __name__ == "__main__":
    key = jax.random.PRNGKey(0)
    k_a, k_b = jax.random.split(key)
    _run_case(k_a, 2, 8, 512)   # lane/sublane-aligned shapes
    _run_case(k_b, 2, 7, 500)   # ragged vocab (500) and ragged rows (14) - no pads
    print("KERNEL_OK")
</pallas_src>

<mosaic_0001>
module attributes {stable_mosaic.version = 11 : i64} {
  func.func @_ce_block_kernel(%arg0: i32, %arg1: memref<16x512xf32, #tpu.memory_space<vmem>>, %arg2: memref<16x1xi32, #tpu.memory_space<vmem>>, %arg3: memref<1x8x128xf32, #tpu.memory_space<vmem>>, %arg4: memref<1x8x128xf32, #tpu.memory_space<vmem>>) attributes {dimension_semantics = [#tpu.dimension_semantics<parallel>], iteration_bounds = array<i64: 1>, scalar_prefetch = 0 : i64, scratch_operands = 0 : i64, tpu.core_type = #tpu.core_type<tc>, window_params = [{transform_indices = @transform_0, window_bounds = array<i64: 16, 512>}, {transform_indices = @transform_1, window_bounds = array<i64: 16, 1>}, {transform_indices = @transform_2, window_bounds = array<i64: 1, 8, 128>}, {transform_indices = @transform_3, window_bounds = array<i64: 1, 8, 128>}]} {
    %c0 = arith.constant 0 : index
    %c0_0 = arith.constant 0 : index
    %0 = vector.load %arg2[%c0, %c0_0] : memref<16x1xi32, #tpu.memory_space<vmem>>, vector<16x1xi32>
    %cst = arith.constant 0xFF800000 : f32
    %1 = vector.broadcast %cst : f32 to vector<16x1xf32>
    %cst_1 = arith.constant 0.000000e+00 : f32
    %2 = vector.broadcast %cst_1 : f32 to vector<16x1xf32>
    %c0_2 = arith.constant 0 : index
    %c0_3 = arith.constant 0 : index
    %3 = vector.load %arg1[%c0_2, %c0_3] : memref<16x512xf32, #tpu.memory_space<vmem>>, vector<16x512xf32>
    %cst_4 = arith.constant dense<0xFF800000> : vector<16xf32>
    %4 = vector.multi_reduction <maximumf>, %3, %cst_4 [1] : vector<16x512xf32> to vector<16xf32>
    %5 = vector.shape_cast %4 : vector<16xf32> to vector<16x1xf32>
    %6 = arith.maximumf %1, %5 : vector<16x1xf32>
    %7 = tpu.iota {dimensions = array<i32: 1>} : vector<16x512xi32>
    %c0_i32 = arith.constant 0 : i32
    %8 = vector.broadcast %c0_i32 : i32 to vector<16x512xi32>
    %9 = arith.addi %7, %8 : vector<16x512xi32>
    %10 = vector.broadcast %0 : vector<16x1xi32> to vector<16x512xi32>
    %11 = arith.cmpi eq, %9, %10 : vector<16x512xi32>
    %c0_i32_5 = arith.constant 0 : i32
    %12 = arith.sitofp %c0_i32_5 : i32 to f32
    %13 = vector.broadcast %12 : f32 to vector<16x512xf32>
    %14 = arith.select %11, %3, %13 : vector<16x512xi1>, vector<16x512xf32>
    %cst_6 = arith.constant dense<0.000000e+00> : vector<16xf32>
    %15 = vector.multi_reduction <add>, %14, %cst_6 [1] : vector<16x512xf32> to vector<16xf32>
    %16 = vector.shape_cast %15 : vector<16xf32> to vector<16x1xf32>
    %17 = arith.addf %2, %16 : vector<16x1xf32>
    %cst_7 = arith.constant 0.000000e+00 : f32
    %18 = vector.broadcast %cst_7 : f32 to vector<16x1xf32>
    %c0_8 = arith.constant 0 : index
    %c0_9 = arith.constant 0 : index
    %19 = vector.load %arg1[%c0_8, %c0_9] : memref<16x512xf32, #tpu.memory_space<vmem>>, vector<16x512xf32>
    %20 = vector.broadcast %6 : vector<16x1xf32> to vector<16x512xf32>
    %21 = arith.subf %19, %20 : vector<16x512xf32>
    %22 = math.exp %21 : vector<16x512xf32>
    %cst_10 = arith.constant dense<0.000000e+00> : vector<16xf32>
    %23 = vector.multi_reduction <add>, %22, %cst_10 [1] : vector<16x512xf32> to vector<16xf32>
    %24 = vector.shape_cast %23 : vector<16xf32> to vector<16x1xf32>
    %25 = arith.addf %18, %24 : vector<16x1xf32>
    %26 = math.log %25 : vector<16x1xf32>
    %27 = arith.addf %6, %26 : vector<16x1xf32>
    %c-1_i32 = arith.constant -1 : i32
    %28 = vector.broadcast %c-1_i32 : i32 to vector<16x1xi32>
    %29 = arith.cmpi ne, %0, %28 : vector<16x1xi32>
    %30 = arith.subf %27, %17 : vector<16x1xf32>
    %cst_11 = arith.constant 0.000000e+00 : f32
    %31 = vector.broadcast %cst_11 : f32 to vector<16x1xf32>
    %32 = arith.select %29, %30, %31 : vector<16x1xi1>, vector<16x1xf32>
    %33 = vector.shape_cast %32 : vector<16x1xf32> to vector<1x16x1xf32>
    %cst_12 = arith.constant dense<0.000000e+00> : vector<1xf32>
    %34 = vector.multi_reduction <add>, %33, %cst_12 [1, 2] : vector<1x16x1xf32> to vector<1xf32>
    %35 = vector.shape_cast %34 : vector<1xf32> to vector<1x1x1xf32>
    %36 = vector.extract %35[0, 0, 0] : f32 from vector<1x1x1xf32>
    %37 = vector.broadcast %36 : f32 to vector<1x8x128xf32>
    %c0_13 = arith.constant 0 : index
    %c0_14 = arith.constant 0 : index
    %c0_15 = arith.constant 0 : index
    %38 = vector.load %arg3[%c0_13, %c0_14, %c0_15] : memref<1x8x128xf32, #tpu.memory_space<vmem>>, vector<1x8x128xf32>
    tpu.vector_store %arg3[%c0_13, %c0_14, %c0_15], %37 {strides = array<i32>} : memref<1x8x128xf32, #tpu.memory_space<vmem>>, vector<1x8x128xf32>,
    %39 = arith.extui %29 : vector<16x1xi1> to vector<16x1xi32>
    %40 = arith.sitofp %39 : vector<16x1xi32> to vector<16x1xf32>
    %41 = vector.shape_cast %40 : vector<16x1xf32> to vector<1x16x1xf32>
    %cst_16 = arith.constant dense<0.000000e+00> : vector<1xf32>
    %42 = vector.multi_reduction <add>, %41, %cst_16 [1, 2] : vector<1x16x1xf32> to vector<1xf32>
    %43 = vector.shape_cast %42 : vector<1xf32> to vector<1x1x1xf32>
    %44 = vector.extract %43[0, 0, 0] : f32 from vector<1x1x1xf32>
    %45 = vector.broadcast %44 : f32 to vector<1x8x128xf32>
    %c0_17 = arith.constant 0 : index
    %c0_18 = arith.constant 0 : index
    %c0_19 = arith.constant 0 : index
    %46 = vector.load %arg4[%c0_17, %c0_18, %c0_19] : memref<1x8x128xf32, #tpu.memory_space<vmem>>, vector<1x8x128xf32>
    tpu.vector_store %arg4[%c0_17, %c0_18, %c0_19], %45 {strides = array<i32>} : memref<1x8x128xf32, #tpu.memory_space<vmem>>, vector<1x8x128xf32>,
    return
  }
  func.func @transform_0(%arg0: i32) -> (i32, i32) {
    %c0_i32 = arith.constant 0 : i32
    %c0_i32_0 = arith.constant 0 : i32
    return %arg0, %c0_i32 : i32, i32
  }
  func.func @transform_1(%arg0: i32) -> (i32, i32) {
    %c0_i32 = arith.constant 0 : i32
    %c0_i32_0 = arith.constant 0 : i32
    return %arg0, %c0_i32 : i32, i32
  }
  func.func @transform_2(%arg0: i32) -> (i32, i32, i32) {
    %c0_i32 = arith.constant 0 : i32
    %c0_i32_0 = arith.constant 0 : i32
    %c0_i32_1 = arith.constant 0 : i32
    return %arg0, %c0_i32, %c0_i32_0 : i32, i32, i32
  }
  func.func @transform_3(%arg0: i32) -> (i32, i32, i32) {
    %c0_i32 = arith.constant 0 : i32
    %c0_i32_0 = arith.constant 0 : i32
    %c0_i32_1 = arith.constant 0 : i32
    return %arg0, %c0_i32, %c0_i32_0 : i32, i32, i32
  }
}

</mosaic_0001>

<bundles_post_ra>
// kernel: tpu_custom_call.1
= control target key start
LH: loop header
LB: loop body
LE: loop exit
PB: predicated region body
PF: predicated region fallthrough
CT: control target
= control target key end

     0   :  { %9 = vsyncpa [#allocation3], 0  ;;  %s390_s0 = inlined_call_operand.hbm [shape: f32[16,512], index: 0, kind: input, shape index: {}]   ;;  %s391_s1 = inlined_call_operand.vmem [shape: s32[16,1], index: 1, kind: input, shape index: {}]   ;;  %s392_s2 = inlined_call_operand.hbm [shape: f32[1,8,128], index: 2, kind: output, shape index: {0}]   ;;  %s393_s3 = inlined_call_operand.hbm [shape: f32[1,8,128], index: 3, kind: output, shape index: {1}]  }
   0x1   :  { %10 = vsyncpa [#allocation4], 0 }
   0x2   :  { %11 = vsyncpa [#allocation7], 0  ;;  %s299_s12 = smov [#allocation2]  }
   0x3   :  { %s17_s13 = sshll.u32 %s299_s12, 4  ;;  %s18_s13 = int_to_ptr.vmem [resolvable:$true] %s17_s13 }
   0x4   :  { %s241_s14 = scalar_lea.vmem %s18_s13, 1024  ;;  %p246_p1 = scmp.lt.s32.totalorder %s18_s13, %s18_s13 }
   0x5   :  { %p242_p0 = scmp.ne.s32.totalorder %s18_s13, %s241_s14  ;;  %p247_p2 = scmp.lt.s32.totalorder %s241_s14, %s241_s14 }
   0x7   :  { %p248_p3 = por %p247_p2, %p246_p1 }
   0x9   :  { %p249_p4 = pnand %p248_p3, %p242_p0 }
   0xb   :  { %252 = shalt.err (!%p249_p4)
}
   0xc   :  { %s300_s15 = smov 512   ;;  %s301_s16 = smov 32  }
   0xd   :  { %23 = dma.hbm_to_vmem [thread:$0]  %s390_s0, 1024, %s18_s13, [#allocation3], %s300_s15, %s300_s15, %s301_s16  }
   0xe   :  { %293 = dma.done.wait [#allocation3], 1024  }
   0xf   :  { %294 = vsyncadd [#allocation3], 4294966272  ;;  %v302_v0 = vmov 0   ;;  %v31_v1 = vld [vmem:[#allocation2] sm:$0xff]  ;;  %v32_v2 = vld [vmem:[#allocation2 + $0x8] sm:$0xff]  ;;  %v49_v18 = vlaneseq  ;;  %vm136_vm10 = vcmask 7168  }
  0x10   :  { %211 = vset.pattern.permute.xlu1 %v302_v0  ;;  %212 = vset.pattern.permute.xlu0 %v302_v0  ;;  %v33_v3 = vld [vmem:[#allocation2 + $0x10] sm:$0xff]  ;;  %v329_v4 = vld [vmem:[#allocation2 + $0x18] sm:$0xff]  ;;  %v35_v6 = vld [vmem:[#allocation2 + $0x20] sm:$0xff]  ;;  %s305_s24 = smov [#allocation6]  }
  0x11   :  { %v39_v5 = vmax.f32 %v31_v1, %v33_v3  ;;  %v36_v7 = vld [vmem:[#allocation2 + $0x28] sm:$0xff]  ;;  %v40_v8 = vmax.f32 %v32_v2, %v329_v4  ;;  %v332_v9 = vld [vmem:[#allocation2 + $0x30] sm:$0xff]  ;;  %v334_v10 = vld [vmem:[#allocation2 + $0x38] sm:$0xff]  ;;  %v50_v28 = vand.u32 127, %v49_v18  ;;  %s185_s25 = sshll.u32 %s305_s24, 4  ;;  %s186_s25 = int_to_ptr.vmem [resolvable:$true] %s185_s25 }
  0x12   :  { %v339_v11 = vld [vmem:[%s391_s1] sm:$0xff]  ;;  %v44_v12 = vmax.f32 %v35_v6, %v332_v9  ;;  %v45_v13 = vmax.f32 %v36_v7, %v334_v10  ;;  %v347_v15 = vld [vmem:[%s391_s1 + $0x8] sm:$0xff]  ;;  %s304_s1 = smov [#allocation5]  }
  0x13   :  { %55 = vperm.xlu1 %211, %v339_v11   ;;  %v41_v14 = vmax.f32 %v39_v5, %v40_v8  ;;  %v51_v37 = vadd.s32 128, %v50_v28  ;;  %v52_v39 = vadd.s32 256, %v50_v28  ;;  %v53_v43 = vadd.s32 384, %v50_v28  ;;  %s175_s22 = sshll.u32 %s304_s1, 4  ;;  %s176_s22 = int_to_ptr.vmem [resolvable:$true] %s175_s22 }
  0x14   :  { %v46_v16 = vmax.f32 %v44_v12, %v45_v13  ;;  %vm130_vm8 = vcmp.ne.s32.totalorder %v339_v11, 4294967295  ;;  %vm131_vm9 = vcmp.ne.s32.totalorder %v347_v15, 4294967295  ;;  %s253_s26 = scalar_lea.vmem %s176_s22, 128  ;;  %p258_p6 = scmp.lt.s32.totalorder %s176_s22, %s176_s22 }
  0x15   :  { %42 = vmax.xlane.f32.xlu0 %v41_v14  ;;  %p254_p5 = scmp.ne.s32.totalorder %s176_s22, %s253_s26  ;;  %p259_p7 = scmp.lt.s32.totalorder %s253_s26, %s253_s26 }
  0x17   :  { %58 = vperm.xlu1 %211, %v347_v15   ;;  %p260_p8 = por %p259_p7, %p258_p6 }
  0x19   :  { %47 = vmax.xlane.f32.xlu0 %v46_v16  ;;  %p261_p9 = pnand %p260_p8, %p254_p5 }
  0x8e   :  { %v56_v35 = vpop.permute.xlu1 %55 }
  0x8f   :  { %vm60_vm0 = vcmp.eq.s32.totalorder %v50_v28, %v56_v35  ;;  %vm61_vm1 = vcmp.eq.s32.totalorder %v51_v37, %v56_v35  ;;  %vm62_vm4 = vcmp.eq.s32.totalorder %v52_v39, %v56_v35  ;;  %vm63_vm5 = vcmp.eq.s32.totalorder %v53_v43, %v56_v35 }
  0x90   :  { %v68_v41 = vsel %vm60_vm0, %v31_v1, 0.0  ;;  %v69_v42 = vsel %vm61_vm1, %v32_v2, 0.0  ;;  %v70_v47 = vsel %vm62_vm4, %v33_v3, 0.0  ;;  %v71_v58 = vsel %vm63_vm5, %v329_v4, 0.0 }
  0x91   :  { %v76_v45 = vadd.f32 %v69_v42, %v68_v41 }
  0x92   :  { %v59_v40 = vpop.permute.xlu1 %58 }
  0x93   :  { %vm64_vm2 = vcmp.eq.s32.totalorder %v50_v28, %v59_v40  ;;  %vm65_vm3 = vcmp.eq.s32.totalorder %v51_v37, %v59_v40  ;;  %vm66_vm6 = vcmp.eq.s32.totalorder %v52_v39, %v59_v40  ;;  %v77_v55 = vadd.f32 %v76_v45, %v70_v47 }
  0x94   :  { %v72_v48 = vsel %vm64_vm2, %v35_v6, 0.0  ;;  %v73_v49 = vsel %vm65_vm3, %v36_v7, 0.0  ;;  %v74_v59 = vsel %vm66_vm6, %v332_v9, 0.0  ;;  %vm67_vm7 = vcmp.eq.s32.totalorder %v53_v43, %v59_v40 }
  0x95   :  { %v81_v56 = vadd.f32 %v73_v49, %v72_v48  ;;  %v78_v0 = vadd.f32 %v77_v55, %v71_v58 }
  0x9e   :  { %v350_v17 = vpop.xlane.xlu0 %42 }
  0x9f   :  { %v88_v19 = vsub.f32 %v31_v1, %v350_v17  ;;  %v89_v20 = vsub.f32 %v32_v2, %v350_v17  ;;  %v90_v21 = vsub.f32 %v33_v3, %v350_v17  ;;  %v91_v22 = vsub.f32 %v329_v4, %v350_v17 }
  0xa0   :  { %v82_v1 = vadd.f32 %v81_v56, %v74_v59  ;;  %v75_v3 = vsel %vm67_vm7, %v334_v10, 0.0  ;;  %v303_v4 = vmov 0.0  }
  0xa1   :  { %v96_v23 = vmul.f32 1.442695, %v88_v19  ;;  %v98_v24 = vmul.f32 1.442695, %v89_v20  ;;  %v100_v25 = vmul.f32 1.442695, %v90_v21 }
  0xa2   :  { %v102_v26 = vmul.f32 1.442695, %v91_v22  ;;  %v357_v27 = vpop.xlane.xlu0 %47  ;;  %v199_v8 = vsel %vm131_vm9, 1.0, %v303_v4 }
  0xa3   :  { %213 = vpow2.f32 %v96_v23  ;;  %v92_v29 = vsub.f32 %v35_v6, %v357_v27  ;;  %v93_v30 = vsub.f32 %v36_v7, %v357_v27  ;;  %v94_v31 = vsub.f32 %v332_v9, %v357_v27 }
  0xa4   :  { %215 = vpow2.f32 %v98_v24  ;;  %v95_v32 = vsub.f32 %v334_v10, %v357_v27  ;;  %v83_v6 = vadd.f32 %v82_v1, %v75_v3  ;;  %v198_v7 = vsel %vm130_vm8, 1.0, %v303_v4 }
  0xa5   :  { %217 = vpow2.f32 %v100_v25  ;;  %v104_v33 = vmul.f32 1.442695, %v92_v29  ;;  %v106_v34 = vmul.f32 1.442695, %v93_v30  ;;  %v108_v36 = vmul.f32 1.442695, %v94_v31 }
  0xa6   :  { %219 = vpow2.f32 %v102_v26  ;;  %v110_v38 = vmul.f32 1.442695, %v95_v32  ;;  %v155_v9 = vsel %vm136_vm10, %v198_v7, 0.0  ;;  %v156_v10 = vsel %vm136_vm10, %v199_v8, 0.0 }
  0xa7   :  { %221 = vpow2.f32 %v104_v33  ;;  %v157_v12 = vadd.f32 %v156_v10, %v155_v9 }
  0xa8   :  { %223 = vpow2.f32 %v106_v34 }
  0xa9   :  { %225 = vpow2.f32 %v108_v36 }
  0xaa   :  { %227 = vpow2.f32 %v110_v38 }
  0xb0   :  { %v214_v44 = vpop.eup %213 }
  0xb1   :  { %v216_v46 = vpop.eup %215 }
  0xb2   :  { %v218_v50 = vpop.eup %217  ;;  %v112_v51 = vadd.f32 %v216_v46, %v214_v44 }
  0xb3   :  { %v220_v52 = vpop.eup %219 }
  0xb4   :  { %v222_v53 = vpop.eup %221  ;;  %v113_v54 = vadd.f32 %v218_v50, %v112_v51 }
  0xb5   :  { %v224_v57 = vpop.eup %223 }
  0xb6   :  { %v114_v60 = vadd.f32 %v220_v52, %v113_v54  ;;  %v117_v61 = vadd.f32 %v224_v57, %v222_v53  ;;  %v226_v62 = vpop.eup %225 }
  0xb7   :  { %v228_v2 = vpop.eup %227 }
  0xb8   :  { %115 = vadd.xlane.f32.xlu0 %v114_v60  ;;  %v118_v63 = vadd.f32 %v226_v62, %v117_v61 }
  0xba   :  { %v119_v5 = vadd.f32 %v228_v2, %v118_v63 }
  0xbc   :  { %120 = vadd.xlane.f32.xlu1 %v119_v5  ;;  %79 = vadd.xlane.f32.xlu0 %v78_v0 }
  0xc0   :  { %84 = vadd.xlane.f32.xlu0 %v83_v6 }
 0x141   :  { %v116_v13 = vpop.xlane.xlu0 %115 }
 0x142   :  { %229 = vlog2.f32 %v116_v13 }
 0x145   :  { %v121_v14 = vpop.xlane.xlu1 %120  ;;  %v80_v19 = vpop.xlane.xlu0 %79 }
 0x146   :  { %231 = vlog2.f32 %v121_v14 }
 0x149   :  { %v85_v25 = vpop.xlane.xlu0 %84 }
 0x14f   :  { %v230_v16 = vpop.eup %229 }
 0x150   :  { %v125_v18 = vmul.f32 0.6931472, %v230_v16 }
 0x152   :  { %v128_v20 = vadd.f32 %v125_v18, %v350_v17 }
 0x153   :  { %v232_v21 = vpop.eup %231 }
 0x154   :  { %v127_v22 = vmul.f32 0.6931472, %v232_v21  ;;  %v132_v23 = vsub.f32 %v128_v20, %v80_v19 }
 0x156   :  { %v129_v24 = vadd.f32 %v127_v22, %v357_v27  ;;  %v134_v26 = vsel %vm130_vm8, %v132_v23, 0.0 }
 0x157   :  { %v137_v30 = vsel %vm136_vm10, %v134_v26, 0.0 }
 0x158   :  { %v133_v28 = vsub.f32 %v129_v24, %v85_v25 }
 0x15a   :  { %v135_v29 = vsel %vm131_vm9, %v133_v28, 0.0 }
 0x15b   :  { %v138_v31 = vsel %vm136_vm10, %v135_v29, 0.0 }
 0x15c   :  { %v139_v32 = vadd.f32 %v138_v31, %v137_v30 }
 0x15e   :  { %140 = vadd.xlane.f32.xlu0 %v139_v32 }
 0x162   :  { %158 = vadd.xlane.f32.xlu0 %v157_v12 }
 0x1e7   :  { %v141_v17 = vpop.xlane.xlu0 %140 }
 0x1e8   :  { %v142_v33 = vrot.slane %v141_v17, 4 }
 0x1ea   :  { %v143_v34 = vadd.f32 %v142_v33, %v141_v17 }
 0x1eb   :  { %v159_v35 = vpop.xlane.xlu0 %158 }
 0x1ec   :  { %v144_v27 = vrot.slane %v143_v34, 2  ;;  %v160_v36 = vrot.slane %v159_v35, 4 }
 0x1ee   :  { %v161_v37 = vadd.f32 %v160_v36, %v159_v35  ;;  %v145_v11 = vadd.f32 %v144_v27, %v143_v34 }
 0x1f0   :  { %v162_v38 = vrot.slane %v161_v37, 2  ;;  %v146_v39 = vrot.slane %v145_v11, 1 }
 0x1f2   :  { %v163_v40 = vadd.f32 %v162_v38, %v161_v37  ;;  %v147_v15 = vadd.f32 %v146_v39, %v145_v11 }
 0x1f4   :  { %200 = vpush %v147_v15  ;;  %v164_v41 = vrot.slane %v163_v40, 1 }
 0x1f6   :  { %v165_v42 = vadd.f32 %v164_v41, %v163_v40 }
 0x1f8   :  { %202 = vpush %v165_v42 }
 0x225   :  { %s201_s23 = spop %200 }
 0x226   :  { %v149_v43 = vstv %s201_s23 }
 0x227   :  { %150 = vst [vmem:[#allocation5] sm:$0xff] %v149_v43 }
 0x228   :  { %264 = shalt.err (!%p261_p9)
}
 0x229   :  { %178 = dma.vmem_to_hbm [thread:$0]  %s176_s22, 128, %s392_s2, [#allocation4]  }
 0x22a   :  { %s203_s29 = spop %202  ;;  %s273_s30 = scalar_lea.vmem %s186_s25, 128 }
 0x22b   :  { %v167_v44 = vstv %s203_s29  ;;  %p274_p10 = scmp.ne.s32.totalorder %s186_s25, %s273_s30  ;;  %p278_p11 = scmp.lt.s32.totalorder %s186_s25, %s186_s25 }
 0x22c   :  { %168 = vst [vmem:[#allocation6] sm:$0xff] %v167_v44  ;;  %p279_p12 = scmp.lt.s32.totalorder %s273_s30, %s273_s30 }
 0x22e   :  { %p280_p13 = por %p279_p12, %p278_p11 }
 0x230   :  { %p281_p0 = pnand %p280_p13, %p274_p10 }
 0x232   :  { %284 = shalt.err (!%p281_p0)
}
 0x233   :  { %188 = dma.vmem_to_hbm [thread:$0]  %s186_s25, 128, %s393_s3, [#allocation7]  }
 0x234   :  { %295 = dma.done.wait [#allocation4], 128  }
 0x235   :  { %296 = vsyncadd [#allocation4], 4294967168 }
 0x236   :  { %297 = dma.done.wait [#allocation7], 128  }
 0x237   :  { %298 = vsyncadd [#allocation7], 4294967168 }
 0x238   :  { %195 = vsyncpa [#allocation3], 1 }
 0x239   :  { %196 = vsyncpa [#allocation4], 1 }
 0x23a   :  { %197 = vsyncpa [#allocation7], 1 }

</bundles_post_ra>
